<compile_context>
chip_gen: v6e
topology: v6e:2x2x1
jax: 0.10.0
libtpu: 0.0.40
codegen_flags: <defaults>
</compile_context>

<pallas_src>
import jax
import jax.numpy as jnp
from jax.experimental import pallas as pl
from jax.experimental.pallas import tpu as pltpu


def actor_kernel(x_ref, w1_ref, b1_ref, w2_ref, b2_ref, w3_ref, b3_ref, o_ref):
    # x_ref: (D, TB) -- batch on the lane axis.
    x = x_ref[...]

    # Layer 1: Linear + ReLU   (MXU, f32 accumulate) -> (16, TB)
    h1 = jnp.dot(w1_ref[...], x, preferred_element_type=jnp.float32)
    h1 = jnp.maximum(h1 + b1_ref[...], 0.0)          # b1 (16,1) lane-broadcast

    # Layer 2: Linear + ReLU   (MXU) -> (16, TB)
    h2 = jnp.dot(w2_ref[...], h1, preferred_element_type=jnp.float32)
    h2 = jnp.maximum(h2 + b2_ref[...], 0.0)

    # Layer 3: (1,16) x (16,TB) done on VPU/XLU instead of a wasted MXU pass:
    # broadcast-multiply by the weight column, sublane-reduce, add SMEM scalar.
    h3 = jnp.sum(w3_ref[...] * h2, axis=0, keepdims=True) + b3_ref[0]
    h3 = jnp.maximum(h3, 0.0)                         # ReLU (as in the module)
    o_ref[...] = jnp.tanh(h3).astype(o_ref.dtype)     # (1, TB), lane-dense store


def _pick_tile(batch, tb):
    """Pick a lane-aligned batch tile TB and the padded batch size."""
    b_pad = ((batch + 127) // 128) * 128          # lane-align
    tile = tb if b_pad >= tb else b_pad
    b_pad = ((b_pad + tile - 1) // tile) * tile   # make divisible by the tile
    return tile, b_pad


def actor_forward(x, params, *, tb=512):
    """x: (B, D) f32.  params: (w1,b1,w2,b2,w3,b3) in transposed layout."""
    w1, b1, w2, b2, w3, b3 = params
    B, D = x.shape
    TB, B_pad = _pick_tile(B, tb)

    # Transpose so batch is the lane (last) axis; zero-pad batch to tile size.
    xt = x.T                                       # (D, B)
    if B_pad != B:
        xt = jnp.pad(xt, ((0, 0), (0, B_pad - B)))

    grid = (B_pad // TB,)

    flops = 2 * B_pad * (D * 16 + 16 * 16 + 16)
    bytes_accessed = (xt.size + B_pad) * 4 + sum(p.size * 4 for p in params)

    out = pl.pallas_call(
        actor_kernel,
        out_shape=jax.ShapeDtypeStruct((1, B_pad), jnp.float32),
        grid=grid,
        in_specs=[
            pl.BlockSpec((D, TB), lambda i: (0, i)),     # x tile (pipelined)
            pl.BlockSpec((16, D), lambda i: (0, 0)),     # w1 (VMEM-resident)
            pl.BlockSpec((16, 1), lambda i: (0, 0)),     # b1
            pl.BlockSpec((16, 16), lambda i: (0, 0)),    # w2
            pl.BlockSpec((16, 1), lambda i: (0, 0)),     # b2
            pl.BlockSpec((16, 1), lambda i: (0, 0)),     # w3 column
            pl.BlockSpec(memory_space=pltpu.MemorySpace.SMEM),  # b3 scalar
        ],
        out_specs=pl.BlockSpec((1, TB), lambda i: (0, i)),
        compiler_params=pltpu.CompilerParams(
            dimension_semantics=("parallel",)),
        cost_estimate=pl.CostEstimate(
            flops=flops, transcendentals=B_pad, bytes_accessed=bytes_accessed),
    )(xt, w1, b1, w2, b2, w3, b3)

    return out[:, :B].T                            # (B, 1)


def init_params(key, input_dim, fc1_dims=16, fc2_dims=16):
    """PyTorch default init, weights stored (out, in) as in torch.nn.Linear."""
    ks = jax.random.split(key, 6)

    def uniform(k, shape, fan_in):
        bound = 1.0 / jnp.sqrt(fan_in)
        return jax.random.uniform(k, shape, jnp.float32, -bound, bound)

    w1 = uniform(ks[0], (fc1_dims, input_dim), input_dim)   # (16, D)
    b1 = uniform(ks[1], (fc1_dims, 1), input_dim)           # (16, 1)
    w2 = uniform(ks[2], (fc2_dims, fc1_dims), fc1_dims)     # (16, 16)
    b2 = uniform(ks[3], (fc2_dims, 1), fc1_dims)            # (16, 1)
    w3 = uniform(ks[4], (fc2_dims, 1), fc2_dims)            # (16, 1) = W3^T
    b3 = uniform(ks[5], (1,), fc2_dims)                     # scalar
    return (w1, b1, w2, b2, w3, b3)


def reference_forward(x, params):
    w1, b1, w2, b2, w3, b3 = params
    h = jnp.maximum(x @ w1.T + b1.T, 0.0)
    h = jnp.maximum(h @ w2.T + b2.T, 0.0)
    h = jnp.maximum(h @ w3 + b3, 0.0)
    return jnp.tanh(h)


if __name__ == "__main__":
    key = jax.random.PRNGKey(0)
    k_x, k_p, k_x2 = jax.random.split(key, 3)

    batch, input_dim = 8, 8
    x = jax.random.normal(k_x, (batch, input_dim), dtype=jnp.float32)
    params = init_params(k_p, input_dim, fc1_dims=16, fc2_dims=16)

    out = jax.block_until_ready(actor_forward(x, params))
    ref = reference_forward(x, params)
    assert out.shape == (batch, 1)
    assert jnp.allclose(out, ref, atol=1e-5, rtol=1e-5), "mismatch vs reference"

    # Exercise the multi-tile (gridded, pipelined) path with a ragged batch.
    x2 = jax.random.normal(k_x2, (300, input_dim), dtype=jnp.float32)
    out2 = jax.block_until_ready(actor_forward(x2, params, tb=128))
    ref2 = reference_forward(x2, params)
    assert out2.shape == (300, 1)
    assert jnp.allclose(out2, ref2, atol=1e-5, rtol=1e-5), "mismatch (tiled)"

    print("KERNEL_OK")
</pallas_src>

<mosaic_0001>
module attributes {stable_mosaic.version = 11 : i64} {
  func.func @actor_kernel(%arg0: i32, %arg1: memref<8x128xf32, #tpu.memory_space<vmem>>, %arg2: memref<16x8xf32, #tpu.memory_space<vmem>>, %arg3: memref<16x1xf32, #tpu.memory_space<vmem>>, %arg4: memref<16x16xf32, #tpu.memory_space<vmem>>, %arg5: memref<16x1xf32, #tpu.memory_space<vmem>>, %arg6: memref<16x1xf32, #tpu.memory_space<vmem>>, %arg7: memref<1xf32, #tpu.memory_space<smem>>, %arg8: memref<1x128xf32, #tpu.memory_space<vmem>>) attributes {dimension_semantics = [#tpu.dimension_semantics<parallel>], iteration_bounds = array<i64: 1>, scalar_prefetch = 0 : i64, scratch_operands = 0 : i64, tpu.core_type = #tpu.core_type<tc>, window_params = [{transform_indices = @transform_0, window_bounds = array<i64: 8, 128>}, {pipeline_mode = #tpu.pipeline_mode<synchronous>, transform_indices = @transform_1, window_bounds = array<i64: 16, 8>}, {pipeline_mode = #tpu.pipeline_mode<synchronous>, transform_indices = @transform_2, window_bounds = array<i64: 16, 1>}, {pipeline_mode = #tpu.pipeline_mode<synchronous>, transform_indices = @transform_3, window_bounds = array<i64: 16, 16>}, {pipeline_mode = #tpu.pipeline_mode<synchronous>, transform_indices = @transform_4, window_bounds = array<i64: 16, 1>}, {pipeline_mode = #tpu.pipeline_mode<synchronous>, transform_indices = @transform_5, window_bounds = array<i64: 16, 1>}, {transform_indices = @transform_6, window_bounds = array<i64: 1>}, {transform_indices = @transform_7, window_bounds = array<i64: 1, 128>}]} {
    %c0 = arith.constant 0 : index
    %c0_0 = arith.constant 0 : index
    %0 = vector.load %arg1[%c0, %c0_0] : memref<8x128xf32, #tpu.memory_space<vmem>>, vector<8x128xf32>
    %c0_1 = arith.constant 0 : index
    %c0_2 = arith.constant 0 : index
    %1 = vector.load %arg2[%c0_1, %c0_2] : memref<16x8xf32, #tpu.memory_space<vmem>>, vector<16x8xf32>
    %cst = arith.constant dense<0.000000e+00> : vector<16x128xf32>
    %2 = tpu.matmul %1, %0, %cst {dimension_numbers = #tpu.dot_dimension_numbers<[1], [0], [0], [1], [0, 0, 1, 1], [], []>} : vector<16x8xf32>, vector<8x128xf32>, vector<16x128xf32> -> vector<16x128xf32>
    %c0_3 = arith.constant 0 : index
    %c0_4 = arith.constant 0 : index
    %3 = vector.load %arg3[%c0_3, %c0_4] : memref<16x1xf32, #tpu.memory_space<vmem>>, vector<16x1xf32>
    %4 = vector.broadcast %3 : vector<16x1xf32> to vector<16x128xf32>
    %5 = arith.addf %2, %4 : vector<16x128xf32>
    %cst_5 = arith.constant 0.000000e+00 : f32
    %6 = vector.broadcast %cst_5 : f32 to vector<16x128xf32>
    %7 = arith.maximumf %5, %6 : vector<16x128xf32>
    %c0_6 = arith.constant 0 : index
    %c0_7 = arith.constant 0 : index
    %8 = vector.load %arg4[%c0_6, %c0_7] : memref<16x16xf32, #tpu.memory_space<vmem>>, vector<16x16xf32>
    %cst_8 = arith.constant dense<0.000000e+00> : vector<16x128xf32>
    %9 = tpu.matmul %8, %7, %cst_8 {dimension_numbers = #tpu.dot_dimension_numbers<[1], [0], [0], [1], [0, 0, 1, 1], [], []>} : vector<16x16xf32>, vector<16x128xf32>, vector<16x128xf32> -> vector<16x128xf32>
    %c0_9 = arith.constant 0 : index
    %c0_10 = arith.constant 0 : index
    %10 = vector.load %arg5[%c0_9, %c0_10] : memref<16x1xf32, #tpu.memory_space<vmem>>, vector<16x1xf32>
    %11 = vector.broadcast %10 : vector<16x1xf32> to vector<16x128xf32>
    %12 = arith.addf %9, %11 : vector<16x128xf32>
    %cst_11 = arith.constant 0.000000e+00 : f32
    %13 = vector.broadcast %cst_11 : f32 to vector<16x128xf32>
    %14 = arith.maximumf %12, %13 : vector<16x128xf32>
    %c0_12 = arith.constant 0 : index
    %c0_13 = arith.constant 0 : index
    %15 = vector.load %arg6[%c0_12, %c0_13] : memref<16x1xf32, #tpu.memory_space<vmem>>, vector<16x1xf32>
    %16 = vector.broadcast %15 : vector<16x1xf32> to vector<16x128xf32>
    %17 = arith.mulf %16, %14 : vector<16x128xf32>
    %cst_14 = arith.constant dense<0.000000e+00> : vector<128xf32>
    %18 = vector.multi_reduction <add>, %17, %cst_14 [0] : vector<16x128xf32> to vector<128xf32>
    %19 = vector.shape_cast %18 : vector<128xf32> to vector<1x128xf32>
    %c0_15 = arith.constant 0 : index
    %20 = memref.load %arg7[%c0_15] : memref<1xf32, #tpu.memory_space<smem>>
    %21 = vector.broadcast %20 : f32 to vector<1x128xf32>
    %22 = arith.addf %19, %21 : vector<1x128xf32>
    %cst_16 = arith.constant 0.000000e+00 : f32
    %23 = vector.broadcast %cst_16 : f32 to vector<1x128xf32>
    %24 = arith.maximumf %22, %23 : vector<1x128xf32>
    %25 = math.tanh %24 : vector<1x128xf32>
    %c0_17 = arith.constant 0 : index
    %c0_18 = arith.constant 0 : index
    %26 = vector.load %arg8[%c0_17, %c0_18] : memref<1x128xf32, #tpu.memory_space<vmem>>, vector<1x128xf32>
    tpu.vector_store %arg8[%c0_17, %c0_18], %25 {strides = array<i32>} : memref<1x128xf32, #tpu.memory_space<vmem>>, vector<1x128xf32>,
    return
  }
  func.func @transform_0(%arg0: i32) -> (i32, i32) {
    %c0_i32 = arith.constant 0 : i32
    %c0_i32_0 = arith.constant 0 : i32
    return %c0_i32, %arg0 : i32, i32
  }
  func.func @transform_1(%arg0: i32) -> (i32, i32) {
    %c0_i32 = arith.constant 0 : i32
    %c0_i32_0 = arith.constant 0 : i32
    %c0_i32_1 = arith.constant 0 : i32
    return %c0_i32, %c0_i32_0 : i32, i32
  }
  func.func @transform_2(%arg0: i32) -> (i32, i32) {
    %c0_i32 = arith.constant 0 : i32
    %c0_i32_0 = arith.constant 0 : i32
    %c0_i32_1 = arith.constant 0 : i32
    return %c0_i32, %c0_i32_0 : i32, i32
  }
  func.func @transform_3(%arg0: i32) -> (i32, i32) {
    %c0_i32 = arith.constant 0 : i32
    %c0_i32_0 = arith.constant 0 : i32
    %c0_i32_1 = arith.constant 0 : i32
    return %c0_i32, %c0_i32_0 : i32, i32
  }
  func.func @transform_4(%arg0: i32) -> (i32, i32) {
    %c0_i32 = arith.constant 0 : i32
    %c0_i32_0 = arith.constant 0 : i32
    %c0_i32_1 = arith.constant 0 : i32
    return %c0_i32, %c0_i32_0 : i32, i32
  }
  func.func @transform_5(%arg0: i32) -> (i32, i32) {
    %c0_i32 = arith.constant 0 : i32
    %c0_i32_0 = arith.constant 0 : i32
    %c0_i32_1 = arith.constant 0 : i32
    return %c0_i32, %c0_i32_0 : i32, i32
  }
  func.func @transform_6(%arg0: i32) -> i32 {
    %c0_i32 = arith.constant 0 : i32
    %c0_i32_0 = arith.constant 0 : i32
    return %c0_i32 : i32
  }
  func.func @transform_7(%arg0: i32) -> (i32, i32) {
    %c0_i32 = arith.constant 0 : i32
    %c0_i32_0 = arith.constant 0 : i32
    return %c0_i32, %arg0 : i32, i32
  }
}

</mosaic_0001>

<bundles_post_ra>
// kernel: tpu_custom_call.1
= control target key start
LH: loop header
LB: loop body
LE: loop exit
PB: predicated region body
PF: predicated region fallthrough
CT: control target
= control target key end

     0   :  { %vm43_vm0 = vcmask 64512   ;;  %v317_v4 = vmov 0   ;;  %s400_s0 = inlined_call_operand.vmem [shape: f32[8,128], index: 0, kind: input, shape index: {}]   ;;  %s401_s1 = inlined_call_operand.vmem [shape: f32[16,8], index: 1, kind: input, shape index: {}]   ;;  %s402_s2 = inlined_call_operand.vmem [shape: f32[16,1], index: 2, kind: input, shape index: {}]   ;;  %s403_s3 = inlined_call_operand.vmem [shape: f32[16,16], index: 3, kind: input, shape index: {}]   ;;  %s404_s4 = inlined_call_operand.vmem [shape: f32[16,1], index: 4, kind: input, shape index: {}]   ;;  %s405_s5 = inlined_call_operand.vmem [shape: f32[16,1], index: 5, kind: input, shape index: {}]   ;;  %s406_s6 = inlined_call_operand.<no memory space> [shape: f32[1], index: 6, kind: input, shape index: {}]   ;;  %s407_s7 = inlined_call_operand.hbm [shape: f32[1,128], index: 7, kind: output, shape index: {}]  }
   0x1   :  { %v28_v0 = vld [vmem:[%s400_s0] sm:$0xff]  ;;  %v30_v2 = vld [vmem:[%s401_s1 + $0x8] sm:$0xff]  ;;  %291 = vset.pattern.permute.xlu0 %v317_v4 }
   0x2   :  { %v29_v1 = vld [vmem:[%s401_s1] sm:$0xff]  ;;  %277 = vmatprep.subr.mxu0 %v28_v0  ;;  %v32_v3 = vld [vmem:[%s402_s2 + $0x8] sm:$0xff] }
   0x3   :  { %279 = vmatprep.mubr.msk.f32.mxu0 %vm43_vm0, %v29_v1  ;;  %278 = vmatpush3.msra.mxu0 %v28_v0 }
   0x4   :  { %13 = vsyncpa [#allocation4], 0  ;;  %280 = vmatmul.mubr.msk.f32.vlgmr.msra.gmra.mxu0 %vm43_vm0, %v30_v2  ;;  %40 = vperm.xlu0 %291, %v32_v3   ;;  %v31_v5 = vld [vmem:[%s402_s2] sm:$0xff]  ;;  %vm141_vm1 = vcmask 130048   ;;  %v130_v9 = vld [vmem:[%s404_s4 + $0x8] sm:$0xff]  ;;  %v247_v38 = vstv %s406_s6 }
   0x5   :  { %292 = vset.pattern.permute.xlu1 %v317_v4  ;;  %v225_v6 = vld [vmem:[%s405_s5] sm:$0xff]  ;;  %v226_v10 = vld [vmem:[%s405_s5 + $0x8] sm:$0xff]  ;;  %s318_s5 = smov [#allocation3]  }
   0x6   :  { %v127_v7 = vld [vmem:[%s403_s3] sm:$0xff]  ;;  %v128_v19 = vld [vmem:[%s403_s3 + $0x8] sm:$0xff]  ;;  %s258_s20 = sshll.u32 %s318_s5, 4  ;;  %s259_s20 = int_to_ptr.vmem [resolvable:$true] %s258_s20 }
   0x7   :  { %286 = vmatprep.mubr.msk.f32.mxu1 %vm141_vm1, %v127_v7  ;;  %v129_v8 = vld [vmem:[%s404_s4] sm:$0xff]  ;;  %s295_s21 = scalar_lea.vmem %s259_s20, 16  ;;  %s299_s22 = scalar_lea.vmem %s259_s20, 32 }
   0x8   :  { %35 = vperm.xlu0 %291, %v31_v5   ;;  %133 = vperm.xlu1 %292, %v129_v8   ;;  %p296_p0 = scmp.ne.s32.totalorder %s259_s20, %s295_s21  ;;  %p300_p1 = scmp.lt.s32.totalorder %s259_s20, %s259_s20 }
   0x9   :  { %p301_p2 = scmp.lt.s32.totalorder %s299_s22, %s295_s21 }
   0xb   :  { %p302_p3 = por %p301_p2, %p300_p1 }
   0xc   :  { %229 = vperm.xlu0 %291, %v225_v6   ;;  %138 = vperm.xlu1 %292, %v130_v9  }
   0xd   :  { %p303_p4 = pnand %p302_p3, %p296_p0 }
  0x10   :  { %234 = vperm.xlu1 %292, %v226_v10  }
  0x7f   :  { %v41_v11 = vpop.permute.xlu0 %40 }
  0x83   :  { %v36_v14 = vpop.permute.xlu0 %35  ;;  %v134_v20 = vpop.permute.xlu1 %133 }
  0x87   :  { %v139_v21 = vpop.permute.xlu1 %138  ;;  %v230_v28 = vpop.permute.xlu0 %229 }
  0x8b   :  { %v235_v29 = vpop.permute.xlu1 %234 }
  0xc4   :  { %v281_v12 = vpop.f32.mrf.mxu0 }
  0xc5   :  { %v122_v13 = vadd.f32 %v281_v12, %v41_v11 }
  0xc6   :  { %v116_v15 = vpop.f32.mrf.mxu0 }
  0xc7   :  { %v126_v16 = vmax.f32 %v122_v13, 0.0  ;;  %v117_v17 = vadd.f32 %v116_v15, %v36_v14 }
  0xc9   :  { %v125_v18 = vmax.f32 %v117_v17, 0.0  ;;  %282 = vmatprep.subr.mxu1 %v126_v16 }
  0xca   :  { %283 = vmatpush3.msra.mxu1 %v126_v16 }
  0xcb   :  { %284 = vmatprep.subr.mxu1 %v125_v18 }
  0xcc   :  { %285 = vmatpush3.msra.mxu1 %v125_v18 }
  0xcd   :  { %287 = vmatmul.mubr.msk.f32.vlgmr.msra.gmra.mxu1 %vm141_vm1, %v128_v19 }
 0x18d   :  { %v288_v22 = vpop.f32.mrf.mxu1 }
 0x18e   :  { %v220_v23 = vadd.f32 %v288_v22, %v139_v21 }
 0x18f   :  { %v214_v24 = vpop.f32.mrf.mxu1 }
 0x190   :  { %v224_v25 = vmax.f32 %v220_v23, 0.0  ;;  %v215_v26 = vadd.f32 %v214_v24, %v134_v20 }
 0x192   :  { %v223_v27 = vmax.f32 %v215_v26, 0.0  ;;  %v238_v30 = vmul.f32 %v235_v29, %v224_v25 }
 0x194   :  { %v237_v31 = vmul.f32 %v230_v28, %v223_v27 }
 0x196   :  { %v239_v32 = vadd.f32 %v238_v30, %v237_v31 }
 0x198   :  { %v240_v33 = vrot.slane %v239_v32, 4 }
 0x19a   :  { %v241_v34 = vadd.f32 %v240_v33, %v239_v32 }
 0x19c   :  { %v242_v35 = vrot.slane %v241_v34, 2 }
 0x19e   :  { %v243_v36 = vadd.f32 %v242_v35, %v241_v34 }
 0x1a0   :  { %v244_v37 = vrot.slane %v243_v36, 1 }
 0x1a2   :  { %v245_v39 = vadd.f32 %v244_v37, %v243_v36 }
 0x1a4   :  { %v248_v40 = vadd.f32 %v247_v38, %v245_v39 }
 0x1a6   :  { %v249_v41 = vmax.f32 %v248_v40, 0.0 }
 0x1a8   :  { %293 = vtanh.f32 %v249_v41 }
 0x1b5   :  { %v294_v42 = vpop.eup %293 }
 0x1b6   :  { %251 = vst [vmem:[#allocation3] sm:$0x1] %v294_v42 }
 0x1b7   :  { %306 = shalt.err (!%p303_p4)
}
 0x1b8   :  { %261 = dma.vmem_to_hbm [thread:$0]  %s259_s20, 16, %s407_s7, [#allocation4]  }
 0x1b9   :  { %315 = dma.done.wait [#allocation4], 16  }
 0x1ba   :  { %316 = vsyncadd [#allocation4], 4294967280 }
 0x1bb   :  { %265 = vsyncpa [#allocation4], 1 }

</bundles_post_ra>
